<compile_context>
chip_gen: v6e
topology: v6e:2x2x1
jax: 0.10.0
libtpu: 0.0.40
codegen_flags: <defaults>
</compile_context>

<pallas_src>
import functools

import jax
import jax.numpy as jnp
from jax.experimental import pallas as pl
from jax.experimental.pallas import tpu as pltpu


def _line_conv_kernel(sess_ref, w_ref, da_ref, table_ref, out_ref,
                      rows_ref, sem_ref, *, layers):
    # sess_ref : SMEM (B*S,) int32   -- scalar-prefetched session item ids
    # w_ref    : VMEM (B, B*S) f32   -- pooling weights (mask * 1/len, block-diag)
    # da_ref   : VMEM (B, B) f32     -- D @ A
    # table_ref: HBM  (N, E)         -- raw item table (pl.ANY, gathered manually)
    # out_ref  : VMEM (B, e_tile) f32
    # rows_ref : VMEM (B*S, e_tile)  -- gathered session rows
    num_rows, e_tile = rows_ref.shape
    full_row = (e_tile == table_ref.shape[1])
    col0 = pl.program_id(0) * e_tile

    def _src(row):
        if full_row:                       # static branch (demo path)
            return table_ref.at[row]
        return table_ref.at[row, pl.ds(col0, e_tile)]

    # 1) Gather only the B*S session rows HBM -> VMEM.  All copies are issued
    #    before any wait, so they are in flight concurrently; they are
    #    equal-sized and share one DMA semaphore.
    @pl.loop(0, num_rows)
    def _start(j):
        row = jnp.maximum(sess_ref[j] - 1, 0)      # id 0 == padding -> weight 0 later
        pltpu.make_async_copy(_src(row), rows_ref.at[j], sem_ref.at[0]).start()

    # 2) Wait for all gathers (wait descriptors have identical shapes/sizes).
    @pl.loop(0, num_rows)
    def _wait(j):
        pltpu.make_async_copy(_src(0), rows_ref.at[j], sem_ref.at[0]).wait()

    # 3) Masked mean-pool on the MXU: x[B, e_tile] = W[B, B*S] @ rows[B*S, e_tile].
    #    W already folds the padding mask and the exact 1/session_len.
    x = jnp.dot(w_ref[...], rows_ref[...].astype(jnp.float32),
                preferred_element_type=jnp.float32)

    # 4) Graph-conv epilogue: out = (sum_{l=0..L} (DA)^l x) / (L + 1).
    da = da_ref[...]
    total = x
    for _ in range(layers):                        # static, small
        x = jnp.dot(da, x, preferred_element_type=jnp.float32)
        total = total + x
    out_ref[...] = (total * jnp.float32(1.0 / (layers + 1))).astype(out_ref.dtype)


def line_conv_forward(item_embedding, D, A, session_item, session_len, *, layers):
    """LineConv.forward.  Returns (batch, emb) float32."""
    n_items, emb = item_embedding.shape
    batch, seq = session_item.shape
    num_rows = batch * seq

    # Graph-conv operator: D is diagonal in practice, so DA is a tiny (B,B) op
    # formed once outside the kernel.
    da = jnp.dot(D.astype(jnp.float32), A.astype(jnp.float32),
                 preferred_element_type=jnp.float32)

    # (B, B*S) pooling weights: block-diagonal layout of (mask / session_len).
    # weight_mat[b, b*S + s] = (session_item[b,s] > 0) / session_len[b].
    sess = session_item.astype(jnp.int32)
    w = jnp.where(sess > 0, 1.0, 0.0) / session_len.astype(jnp.float32)   # (B, S)
    eye = jnp.eye(batch, dtype=jnp.float32)
    weight_mat = (eye[:, :, None] * w[None, :, :]).reshape(batch, num_rows)

    # v7x has 2 TensorCores: give the parallel emb axis 2 blocks when the
    # embedding splits into 256-aligned halves; otherwise one full-width,
    # lane-dense block (v5e/v6e are single-TC, so 1 block is optimal there).
    num_e_tiles = 2 if (emb % 512 == 0) else 1
    e_tile = emb // num_e_tiles

    kernel = functools.partial(_line_conv_kernel, layers=layers)

    out = pl.pallas_call(
        kernel,
        out_shape=jax.ShapeDtypeStruct((batch, emb), jnp.float32),
        grid_spec=pltpu.PrefetchScalarGridSpec(
            num_scalar_prefetch=1,                       # session ids -> SMEM
            grid=(num_e_tiles,),
            in_specs=[
                pl.BlockSpec((batch, num_rows), lambda e, ids: (0, 0)),   # weights
                pl.BlockSpec((batch, batch), lambda e, ids: (0, 0)),      # DA
                pl.BlockSpec(memory_space=pl.ANY),                        # item table (HBM)
            ],
            out_specs=pl.BlockSpec((batch, e_tile), lambda e, ids: (0, e)),
            scratch_shapes=[
                pltpu.VMEM((num_rows, e_tile), item_embedding.dtype),     # gathered rows
                pltpu.SemaphoreType.DMA((1,)),
            ],
        ),
        compiler_params=pltpu.CompilerParams(
            dimension_semantics=("parallel",),
        ),
    )(sess.reshape(num_rows), weight_mat, da, item_embedding)

    return out


def _reference(item_embedding, D, A, session_item, session_len, *, layers):
    # Pure-JAX replica of the PyTorch forward for correctness checking.
    emb = item_embedding.shape[1]
    table = jnp.concatenate(
        [jnp.zeros((1, emb), jnp.float32), item_embedding.astype(jnp.float32)], 0)
    seq_h = table[session_item]                     # (B, S, E) gather
    x = jnp.sum(seq_h, axis=1) / session_len        # (B, E)
    da = D.astype(jnp.float32) @ A.astype(jnp.float32)
    acc = x
    for _ in range(layers):
        x = da @ x
        acc = acc + x
    return acc / (layers + 1)


if __name__ == "__main__":
    key = jax.random.PRNGKey(0)
    n_items, emb = 500, 200       # deliberately not tile-aligned
    batch, seq = 8, 12
    layers = 3

    k1, k2, k3, k4 = jax.random.split(key, 4)
    item_embedding = jax.random.normal(k1, (n_items, emb), dtype=jnp.float32)

    # sessions: random lengths, item ids in [1, n_items], padded with id 0
    lens = jax.random.randint(k2, (batch,), 2, seq + 1)
    items = jax.random.randint(k3, (batch, seq), 1, n_items + 1)
    pos = jnp.arange(seq)[None, :]
    session_item = jnp.where(pos < lens[:, None], items, 0).astype(jnp.int32)
    session_len = lens.astype(jnp.float32)[:, None]          # (B, 1)

    # adjacency A and (diagonal) degree normalisation D, like the torch caller
    A = jax.random.uniform(k4, (batch, batch), dtype=jnp.float32)
    D = jnp.diag(1.0 / jnp.sum(A, axis=1))

    ref = _reference(item_embedding, D, A, session_item, session_len, layers=layers)

    out = line_conv_forward(item_embedding, D, A, session_item, session_len,
                            layers=layers)
    out = jax.block_until_ready(out)
    assert out.shape == (batch, emb)
    # Exact 1/len now -> typically ~1e-5 agreement; the tolerance only keeps
    # headroom for default f32 matmul precision on the MXU / in the reference.
    assert jnp.allclose(out, ref, atol=1e-2, rtol=1e-2), "f32 kernel mismatch vs reference"

    # bf16 item table: a one-time caller-side cast (not per-forward); the kernel
    # gathers/pools it unchanged, accumulating in f32.
    out_bf16 = line_conv_forward(item_embedding.astype(jnp.bfloat16), D, A,
                                 session_item, session_len, layers=layers)
    out_bf16 = jax.block_until_ready(out_bf16)
    assert jnp.allclose(out_bf16, ref, atol=5e-2, rtol=5e-2), "bf16 kernel mismatch vs reference"

    print("KERNEL_OK")
</pallas_src>

<mosaic_0001>
module attributes {stable_mosaic.version = 11 : i64} {
  func.func @_line_conv_kernel(%arg0: i32, %arg1: memref<96xi32, #tpu.memory_space<smem>>, %arg2: memref<8x96xf32, #tpu.memory_space<vmem>>, %arg3: memref<8x8xf32, #tpu.memory_space<vmem>>, %arg4: memref<500x200xf32, #tpu.memory_space<any>>, %arg5: memref<8x200xf32, #tpu.memory_space<vmem>>, %arg6: memref<96x200xf32, #tpu.memory_space<vmem>>, %arg7: memref<1x!tpu.dma_semaphore, #tpu.memory_space<semaphore_mem>>) attributes {dimension_semantics = [#tpu.dimension_semantics<parallel>], iteration_bounds = array<i64: 1>, scalar_prefetch = 1 : i64, scratch_operands = 2 : i64, tpu.core_type = #tpu.core_type<tc>, window_params = [{pipeline_mode = #tpu.pipeline_mode<synchronous>, transform_indices = @transform_0, window_bounds = array<i64: 8, 96>}, {pipeline_mode = #tpu.pipeline_mode<synchronous>, transform_indices = @transform_1, window_bounds = array<i64: 8, 8>}, {}, {transform_indices = @transform_3, window_bounds = array<i64: 8, 200>}]} {
    %c0_i32 = arith.constant 0 : i32
    %c96_i32 = arith.constant 96 : i32
    %0 = arith.addi %c0_i32, %c96_i32 : i32
    %c1_i32 = arith.constant 1 : i32
    scf.for %arg8 = %c0_i32 to %0 step %c1_i32  : i32 {
      %c1_i32_16 = arith.constant 1 : i32
      %15 = arith.muli %arg8, %c1_i32_16 : i32
      %c0_i32_17 = arith.constant 0 : i32
      %16 = arith.addi %c0_i32_17, %15 : i32
      %17 = arith.index_cast %16 : i32 to index
      %18 = memref.load %arg1[%17] : memref<96xi32, #tpu.memory_space<smem>>
      %c1_i32_18 = arith.constant 1 : i32
      %19 = arith.subi %18, %c1_i32_18 : i32
      %c0_i32_19 = arith.constant 0 : i32
      %20 = arith.maxsi %19, %c0_i32_19 : i32
      %c0_i32_20 = arith.constant 0 : i32
      %c0_i32_21 = arith.constant 0 : i32
      %21 = tpu.memref_slice %arg4[%20, %c0_i32_21] : memref<500x200xf32, #tpu.memory_space<any>> -> memref<1x200xf32, #tpu.memory_space<any>>
      %22 = tpu.memref_squeeze %21 : memref<1x200xf32, #tpu.memory_space<any>> -> memref<200xf32, #tpu.memory_space<any>>
      %c0_i32_22 = arith.constant 0 : i32
      %23 = tpu.memref_slice %arg6[%16, %c0_i32_22] : memref<96x200xf32, #tpu.memory_space<vmem>> -> memref<1x200xf32, #tpu.memory_space<vmem>>
      %24 = tpu.memref_squeeze %23 : memref<1x200xf32, #tpu.memory_space<vmem>> -> memref<200xf32, #tpu.memory_space<vmem>>
      %25 = tpu.memref_slice %arg7[%c0_i32_20] : memref<1x!tpu.dma_semaphore, #tpu.memory_space<semaphore_mem>> -> memref<1x!tpu.dma_semaphore, #tpu.memory_space<semaphore_mem>>
      %26 = tpu.memref_squeeze %25 : memref<1x!tpu.dma_semaphore, #tpu.memory_space<semaphore_mem>> -> memref<!tpu.dma_semaphore, #tpu.memory_space<semaphore_mem>>
      tpu.enqueue_dma source(%22 : memref<200xf32, #tpu.memory_space<any>>) target(%24 : memref<200xf32, #tpu.memory_space<vmem>>) target_semaphore(%26 : memref<!tpu.dma_semaphore, #tpu.memory_space<semaphore_mem>>)
    }
    %c96_i32_0 = arith.constant 96 : i32
    %c0_i32_1 = arith.constant 0 : i32
    %c96_i32_2 = arith.constant 96 : i32
    %1 = arith.addi %c0_i32_1, %c96_i32_2 : i32
    %c1_i32_3 = arith.constant 1 : i32
    scf.for %arg8 = %c0_i32_1 to %1 step %c1_i32_3  : i32 {
      %c1_i32_16 = arith.constant 1 : i32
      %15 = arith.muli %arg8, %c1_i32_16 : i32
      %c0_i32_17 = arith.constant 0 : i32
      %16 = arith.addi %c0_i32_17, %15 : i32
      %c0_i32_18 = arith.constant 0 : i32
      %c0_i32_19 = arith.constant 0 : i32
      %c0_i32_20 = arith.constant 0 : i32
      %17 = tpu.memref_slice %arg4[%c0_i32_18, %c0_i32_20] : memref<500x200xf32, #tpu.memory_space<any>> -> memref<1x200xf32, #tpu.memory_space<any>>
      %18 = tpu.memref_squeeze %17 : memref<1x200xf32, #tpu.memory_space<any>> -> memref<200xf32, #tpu.memory_space<any>>
      %c0_i32_21 = arith.constant 0 : i32
      %19 = tpu.memref_slice %arg6[%16, %c0_i32_21] : memref<96x200xf32, #tpu.memory_space<vmem>> -> memref<1x200xf32, #tpu.memory_space<vmem>>
      %20 = tpu.memref_squeeze %19 : memref<1x200xf32, #tpu.memory_space<vmem>> -> memref<200xf32, #tpu.memory_space<vmem>>
      %21 = tpu.memref_slice %arg7[%c0_i32_19] : memref<1x!tpu.dma_semaphore, #tpu.memory_space<semaphore_mem>> -> memref<1x!tpu.dma_semaphore, #tpu.memory_space<semaphore_mem>>
      %22 = tpu.memref_squeeze %21 : memref<1x!tpu.dma_semaphore, #tpu.memory_space<semaphore_mem>> -> memref<!tpu.dma_semaphore, #tpu.memory_space<semaphore_mem>>
      tpu.wait_dma2 semaphore(%22 : memref<!tpu.dma_semaphore, #tpu.memory_space<semaphore_mem>>) src(%18 : memref<200xf32, #tpu.memory_space<any>>) dst(%20 : memref<200xf32, #tpu.memory_space<vmem>>)
    }
    %c96_i32_4 = arith.constant 96 : i32
    %c0 = arith.constant 0 : index
    %c0_5 = arith.constant 0 : index
    %2 = vector.load %arg2[%c0, %c0_5] : memref<8x96xf32, #tpu.memory_space<vmem>>, vector<8x96xf32>
    %c0_6 = arith.constant 0 : index
    %c0_7 = arith.constant 0 : index
    %3 = vector.load %arg6[%c0_6, %c0_7] : memref<96x200xf32, #tpu.memory_space<vmem>>, vector<96x200xf32>
    %cst = arith.constant dense<0.000000e+00> : vector<8x200xf32>
    %4 = tpu.matmul %2, %3, %cst {dimension_numbers = #tpu.dot_dimension_numbers<[1], [0], [0], [1], [0, 0, 1, 1], [], []>} : vector<8x96xf32>, vector<96x200xf32>, vector<8x200xf32> -> vector<8x200xf32>
    %c0_8 = arith.constant 0 : index
    %c0_9 = arith.constant 0 : index
    %5 = vector.load %arg3[%c0_8, %c0_9] : memref<8x8xf32, #tpu.memory_space<vmem>>, vector<8x8xf32>
    %cst_10 = arith.constant dense<0.000000e+00> : vector<8x200xf32>
    %6 = tpu.matmul %5, %4, %cst_10 {dimension_numbers = #tpu.dot_dimension_numbers<[1], [0], [0], [1], [0, 0, 1, 1], [], []>} : vector<8x8xf32>, vector<8x200xf32>, vector<8x200xf32> -> vector<8x200xf32>
    %7 = arith.addf %4, %6 : vector<8x200xf32>
    %cst_11 = arith.constant dense<0.000000e+00> : vector<8x200xf32>
    %8 = tpu.matmul %5, %6, %cst_11 {dimension_numbers = #tpu.dot_dimension_numbers<[1], [0], [0], [1], [0, 0, 1, 1], [], []>} : vector<8x8xf32>, vector<8x200xf32>, vector<8x200xf32> -> vector<8x200xf32>
    %9 = arith.addf %7, %8 : vector<8x200xf32>
    %cst_12 = arith.constant dense<0.000000e+00> : vector<8x200xf32>
    %10 = tpu.matmul %5, %8, %cst_12 {dimension_numbers = #tpu.dot_dimension_numbers<[1], [0], [0], [1], [0, 0, 1, 1], [], []>} : vector<8x8xf32>, vector<8x200xf32>, vector<8x200xf32> -> vector<8x200xf32>
    %11 = arith.addf %9, %10 : vector<8x200xf32>
    %cst_13 = arith.constant 2.500000e-01 : f32
    %12 = vector.broadcast %cst_13 : f32 to vector<8x200xf32>
    %13 = arith.mulf %11, %12 : vector<8x200xf32>
    %c0_14 = arith.constant 0 : index
    %c0_15 = arith.constant 0 : index
    %14 = vector.load %arg5[%c0_14, %c0_15] : memref<8x200xf32, #tpu.memory_space<vmem>>, vector<8x200xf32>
    tpu.vector_store %arg5[%c0_14, %c0_15], %13 {strides = array<i32>} : memref<8x200xf32, #tpu.memory_space<vmem>>, vector<8x200xf32>,
    return
  }
  func.func @transform_0(%arg0: i32, %arg1: memref<96xi32, #tpu.memory_space<smem>>) -> (i32, i32) {
    %c0_i32 = arith.constant 0 : i32
    %c0_i32_0 = arith.constant 0 : i32
    %c0_i32_1 = arith.constant 0 : i32
    return %c0_i32, %c0_i32_0 : i32, i32
  }
  func.func @transform_1(%arg0: i32, %arg1: memref<96xi32, #tpu.memory_space<smem>>) -> (i32, i32) {
    %c0_i32 = arith.constant 0 : i32
    %c0_i32_0 = arith.constant 0 : i32
    %c0_i32_1 = arith.constant 0 : i32
    return %c0_i32, %c0_i32_0 : i32, i32
  }
  func.func @transform_3(%arg0: i32, %arg1: memref<96xi32, #tpu.memory_space<smem>>) -> (i32, i32) {
    %c0_i32 = arith.constant 0 : i32
    %c0_i32_0 = arith.constant 0 : i32
    return %c0_i32, %arg0 : i32, i32
  }
}

</mosaic_0001>

<bundles_post_ra>
// kernel: tpu_custom_call.1
= control target key start
LH: loop header
LB: loop body
LE: loop exit
PB: predicated region body
PF: predicated region fallthrough
CT: control target
= control target key end

     0   :  { %s600_s0 = inlined_call_operand.vmem [shape: s32[96], index: 0, kind: input, shape index: {}]   ;;  %s601_s1 = inlined_call_operand.vmem [shape: f32[8,96], index: 1, kind: input, shape index: {}]   ;;  %s602_s2 = inlined_call_operand.vmem [shape: f32[8,8], index: 2, kind: input, shape index: {}]   ;;  %s603_s3 = inlined_call_operand.vmem [shape: f32[500,200], index: 3, kind: input, shape index: {}]   ;;  %s604_s4 = inlined_call_operand.hbm [shape: f32[8,200], index: 4, kind: output, shape index: {}]  }
   0x1   :  { %s9_s17 = sshll.u32 %s600_s0, 4  ;;  %s10_s17 = int_to_ptr.vmem [resolvable:$true] %s9_s17 }
   0x2   :  { %s500_s18 = scalar_lea.vmem %s10_s17, 16  ;;  %p505_p1 = scmp.lt.s32.totalorder %s10_s17, %s10_s17 }
   0x3   :  { %p501_p0 = scmp.ne.s32.totalorder %s10_s17, %s500_s18  ;;  %p506_p2 = scmp.lt.s32.totalorder %s500_s18, %s500_s18 }
   0x5   :  { %p507_p3 = por %p506_p2, %p505_p1 }
   0x7   :  { %p508_p4 = pnand %p507_p3, %p501_p0 }
   0x9   :  { %511 = shalt.err (!%p508_p4)  }
   0xa   :  { %s554_s19 = smov [#allocation5]  }
   0xb   :  { %12 = dma.vmem_to_smem %s10_s17, 16, %s554_s19, [#allocation4] }
   0xc   :  { %540 = dma.done.wait [#allocation4], 16 }
   0xd   :  { %541 = vsyncadd [#allocation4], 4294967280 }
   0xe   :  { %14 = sfence }
   0xf   :  { %15 = vsyncpa [#allocation7], 0  ;;  %s546_s20 = smov 0  }
  0x10 LB: > { %s26_s21 = sld [smem:[#allocation5 + %s548_s20]]  ;;  %s35_s0 = sshrl.u32 %s548_s20, 3  ;;  %s548_s20 = sphi %s546_s20, %s25_s20  }
  0x11   : > { %s36_s23 = sand.u32 7, %s548_s20   ;;  %s475_s24 = sshll.u32 %s35_s0, 4 }
  0x12   : > { %s38_s25 = sadd.s32 %s475_s24, %s36_s23 }
  0x13   : > { %s39_s7 = scalar_lea.vmem [#allocation2], %s38_s25 }
  0x16   : > { %s473_s22 = sadd.s32 4294967295, %s26_s21 }
  0x17   : > { %p28_p5 = scmp.gt.s32.totalorder %s473_s22, 0 }
  0x19   : > { %s606_s22 = smov (!%p28_p5, %s473_s22), 0 }
  0x1a   : > { %s30_s26 = sshrl.u32 %s606_s22, 3  ;;  %s31_s27 = sand.u32 7, %s606_s22  }
  0x1b   : > { %s474_s28 = sshll.u32 %s30_s26, 4 }
  0x1c   : > { %s33_s29 = sadd.s32 %s474_s28, %s31_s27 }
  0x1d   : > { %s34_s6 = scalar_lea.vmem %s603_s3, %s33_s29 }
  0x1e   : > { %v58_v0 = vld [vmem:[%s34_s6] sm:$0x1]  ;;  %v60_v1 = vld [vmem:[%s34_s6 + $0x8] sm:$0x1] }
  0x1f   : > { %59 = vst [vmem:[%s39_s7] sm:$0x1] %v58_v0  ;;  %61 = vst [vmem:[%s39_s7 + $0x8] sm:$0x1] %v60_v1 }
  0x20   : > { %89 = vsyncadd [#allocation3], 32  ;;  %s25_s20 = sadd.s32 1, %s548_s20  }
  0x21   : > { %p22_p6 = scmp.ge.s32.totalorder %s25_s20, 96  }
  0x22   :  { %s550_s8 = smov (%p22_p6), 0  }
  0x23   :  { %24 = sbr.rel (!%p22_p6) target bundleno = 16 (0x10), region = 84 }
  0x28 LB: > { %542 = dma.done.wait [#allocation3], 32  ;;  %s552_s8 = sphi %s550_s8, %s95_s8  }
  0x29   : > { %543 = vsyncadd [#allocation3], 4294967264  ;;  %s95_s8 = sadd.s32 1, %s552_s8  }
  0x2a   : > { %p92_p7 = scmp.ge.s32.totalorder %s95_s8, 96  }
  0x2b   :  { %v122_v2 = vld [vmem:[#allocation2 + $0xb8] sm:$0xff] (%p92_p7)  ;;  %v121_v3 = vld [vmem:[#allocation2 + $0xb0] sm:$0xff] (%p92_p7)  ;;  %v120_v4 = vld [vmem:[#allocation2 + $0xa8] sm:$0xff] (%p92_p7)  ;;  %v555_v6 = vmov (%p92_p7), 0.0   ;;  %vm123_vm0 = vcmask (%p92_p7), 785408   ;;  %vm199_vm1 = vcmask (%p92_p7), 64512  }
  0x2c   :  { %94 = sbr.rel (!%p92_p7) target bundleno = 40 (0x28), region = 95  ;;  %135 = vmatprep.subr.mxu0 (%p92_p7), %v122_v2  ;;  %v119_v5 = vld [vmem:[#allocation2 + $0xa0] sm:$0xff] (%p92_p7)  ;;  %191 = vmatprep.mubr.f32.mxu0 (%p92_p7), %v555_v6  ;;  %v118_v7 = vld [vmem:[#allocation2 + $0x98] sm:$0xff] (%p92_p7)  ;;  %v117_v8 = vld [vmem:[#allocation2 + $0x90] sm:$0xff] (%p92_p7)  ;;  %vm425_vm2 = vcmask (%p92_p7), 588800  }
  0x2d   :  { %136 = vmatpush1.msra.mxu0 (%p92_p7), %v121_v3  ;;  %267 = vmatprep.mubr.f32.mxu1 (%p92_p7), %v555_v6  ;;  %v116_v9 = vld [vmem:[#allocation2 + $0x88] sm:$0xff] (%p92_p7)  ;;  %v115_v10 = vld [vmem:[#allocation2 + $0x80] sm:$0xff] (%p92_p7)  ;;  %v114_v11 = vld [vmem:[#allocation2 + $0x78] sm:$0xff] (%p92_p7) }
  0x2e   :  { %137 = vmatprep.subr.mxu0 (%p92_p7), %v120_v4  ;;  %v113_v12 = vld [vmem:[#allocation2 + $0x70] sm:$0xff] (%p92_p7)  ;;  %v112_v13 = vld [vmem:[#allocation2 + $0x68] sm:$0xff] (%p92_p7)  ;;  %v111_v14 = vld [vmem:[#allocation2 + $0x60] sm:$0xff] (%p92_p7) }
  0x2f   :  { %138 = vmatpush1.msra.mxu0 (%p92_p7), %v119_v5  ;;  %v110_v15 = vld [vmem:[#allocation2 + $0x58] sm:$0xff] (%p92_p7)  ;;  %v109_v16 = vld [vmem:[#allocation2 + $0x50] sm:$0xff] (%p92_p7)  ;;  %v108_v17 = vld [vmem:[#allocation2 + $0x48] sm:$0xff] (%p92_p7) }
  0x30   :  { %139 = vmatprep.subr.mxu0 (%p92_p7), %v118_v7  ;;  %v107_v18 = vld [vmem:[#allocation2 + $0x40] sm:$0xff] (%p92_p7)  ;;  %v106_v19 = vld [vmem:[#allocation2 + $0x38] sm:$0xff] (%p92_p7)  ;;  %v105_v20 = vld [vmem:[#allocation2 + $0x30] sm:$0xff] (%p92_p7) }
  0x31   :  { %140 = vmatpush1.msra.mxu0 %v117_v8  ;;  %v104_v21 = vld [vmem:[#allocation2 + $0x28] sm:$0xff]  ;;  %v103_v22 = vld [vmem:[#allocation2 + $0x20] sm:$0xff]  ;;  %v102_v23 = vld [vmem:[#allocation2 + $0x18] sm:$0xff] }
  0x32   :  { %141 = vmatprep.subr.mxu0 %v116_v9  ;;  %v101_v24 = vld [vmem:[#allocation2 + $0x10] sm:$0xff]  ;;  %v100_v25 = vld [vmem:[#allocation2 + $0x8] sm:$0xff]  ;;  %v99_v26 = vld [vmem:[#allocation2] sm:$0xff] }
  0x33   :  { %142 = vmatpush1.msra.mxu0 %v115_v10  ;;  %v98_v27 = vld [vmem:[%s601_s1] sm:$0xff]  ;;  %s556_s1 = smov [#allocation6]  }
  0x34   :  { %143 = vmatprep.subr.mxu0 %v114_v11  ;;  %v198_v30 = vld [vmem:[%s602_s2] sm:$0xff]  ;;  %s433_s2 = sshll.u32 %s556_s1, 4  ;;  %s434_s2 = int_to_ptr.vmem [resolvable:$true] %s433_s2 }
  0x35   :  { %144 = vmatpush1.msra.mxu0 %v113_v12  ;;  %s512_s12 = scalar_lea.vmem %s434_s2, 256  ;;  %p517_p9 = scmp.lt.s32.totalorder %s434_s2, %s434_s2 }
  0x36   :  { %145 = vmatprep.subr.mxu0 %v112_v13  ;;  %p513_p8 = scmp.ne.s32.totalorder %s434_s2, %s512_s12  ;;  %p518_p10 = scmp.lt.s32.totalorder %s512_s12, %s512_s12 }
  0x37   :  { %146 = vmatpush1.msra.mxu0 %v111_v14 }
  0x38   :  { %147 = vmatprep.subr.mxu0 %v110_v15  ;;  %p519_p11 = por %p518_p10, %p517_p9 }
  0x39   :  { %148 = vmatpush1.msra.mxu0 %v109_v16 }
  0x3a   :  { %149 = vmatprep.subr.mxu0 %v108_v17  ;;  %p520_p12 = pnand %p519_p11, %p513_p8 }
  0x3b   :  { %150 = vmatpush1.msra.mxu0 %v107_v18 }
  0x3c   :  { %151 = vmatprep.subr.mxu0 %v106_v19 }
  0x3d   :  { %152 = vmatpush1.msra.mxu0 %v105_v20 }
  0x3e   :  { %153 = vmatprep.subr.mxu0 %v104_v21 }
  0x3f   :  { %154 = vmatpush1.msra.mxu0 %v103_v22 }
  0x40   :  { %155 = vmatprep.subr.mxu0 %v102_v23 }
  0x41   :  { %156 = vmatpush1.msra.mxu0 %v101_v24 }
  0x42   :  { %157 = vmatprep.subr.mxu0 %v100_v25 }
  0x43   :  { %158 = vmatpush1.msra.mxu0 %v99_v26 }
  0x44   :  { %476 = vmatmul.mubr.msk.f32.vlgmr.msra.gmra.mxu0 %vm123_vm0, %v98_v27 }
 0x104   :  { %v193_v28 = vpop.f32.mrf.mxu0 }
 0x106   :  { %v195_v29 = vpop.f32.mrf.mxu0 }
 0x107   :  { %233 = vmatprep.subr.mxu1 %v195_v29 }
 0x108   :  { %234 = vmatpush1.msra.mxu1 %v193_v28 }
 0x109   :  { %477 = vmatmul.mubr.msk.f32.vlgmr.msra.gmra.mxu1 %vm199_vm1, %v198_v30 }
 0x10a   :  { %340 = vmatprep.mubr.f32.mxu1 %v555_v6 }
 0x1c9   :  { %v269_v31 = vpop.f32.mrf.mxu1 }
 0x1ca   :  { %v274_v33 = vadd.f32 %v269_v31, %v193_v28 }
 0x1cb   :  { %v271_v32 = vpop.f32.mrf.mxu1 }
 0x1cc   :  { %306 = vmatprep.subr.mxu1 %v271_v32  ;;  %v275_v37 = vadd.f32 %v271_v32, %v195_v29 }
 0x1cd   :  { %307 = vmatpush1.msra.mxu1 %v269_v31 }
 0x1ce   :  { %478 = vmatmul.mubr.msk.f32.vlgmr.msra.gmra.mxu1 %vm199_vm1, %v198_v30 }
 0x1cf   :  { %413 = vmatprep.mubr.f32.mxu1 %v555_v6 }
 0x28e   :  { %v342_v34 = vpop.f32.mrf.mxu1 }
 0x28f   :  { %v347_v35 = vadd.f32 %v342_v34, %v274_v33 }
 0x290   :  { %v344_v36 = vpop.f32.mrf.mxu1 }
 0x291   :  { %379 = vmatprep.subr.mxu1 %v344_v36  ;;  %v348_v39 = vadd.f32 %v344_v36, %v275_v37 }
 0x292   :  { %380 = vmatpush1.msra.mxu1 %v342_v34 }
 0x293   :  { %479 = vmatmul.mubr.msk.f32.vlgmr.msra.gmra.mxu1 %vm199_vm1, %v198_v30 }
 0x353   :  { %v415_v38 = vpop.f32.mrf.mxu1 }
 0x354   :  { %v420_v40 = vadd.f32 %v415_v38, %v347_v35 }
 0x355   :  { %v417_v41 = vpop.f32.mrf.mxu1 }
 0x356   :  { %v422_v42 = vmul.f32 0.25, %v420_v40  ;;  %v421_v43 = vadd.f32 %v417_v41, %v348_v39 }
 0x358   :  { %424 = vst [vmem:[#allocation6] sm:$0xff] %v422_v42  ;;  %v423_v44 = vmul.f32 0.25, %v421_v43 }
 0x35a   :  { %426 = vst.msk [vmem:[#allocation6 + $0x8] sm:$0xff] %vm425_vm2, %v423_v44 }
 0x35b   :  { %523 = shalt.err (!%p520_p12)
}
 0x35c   :  { %436 = dma.vmem_to_hbm [thread:$0]  %s434_s2, 256, %s604_s4, [#allocation7]  }
 0x35d   :  { %544 = dma.done.wait [#allocation7], 256  }
 0x35e   :  { %545 = vsyncadd [#allocation7], 4294967040 }
 0x35f   :  { %440 = vsyncpa [#allocation7], 1 }
 0x360   :  { %441 = vsyncmov [#allocation3] }
 0x363   :  { %s442_s15 = vpop.sfrf %441 }
 0x364   :  { %p480_p13 = scmp.ne.s32.totalorder %s442_s15, 0 }
 0x366   :  { %446 = shalt.err (%p480_p13)  }

</bundles_post_ra>
